<compile_context>
chip_gen: v7x
topology: tpu7x:2x2x1
jax: 0.10.0
libtpu: 0.0.40
codegen_flags: <defaults>
</compile_context>

<pallas_src>
import jax
import jax.numpy as jnp
from jax import lax
from jax.experimental import pallas as pl
from jax.experimental.pallas import tpu as pltpu


def gru_kernel(x_ref, wih_ref, whh_ref, misc_ref, out_ref, hn_ref):
    S = x_ref.shape[0]             # seq
    H = whh_ref.shape[0]           # hidden
    GW = whh_ref.shape[1]          # 3 * hidden, packed [r | z | n]
    OP = out_ref.shape[-1]         # lane-dense output width (multiple of 128)

    # --- unpack the small packed operands (ref slices -> single loads) ---
    bih = misc_ref[0:1, :GW]                   # (1, GW)
    bhh = misc_ref[1:2, :GW]                   # (1, GW)
    h0 = misc_ref[2:3, :H]                     # (1, H)
    bo = misc_ref[3:4, :OP]                    # (1, OP)  (real bias at lane 0)
    wo = misc_ref[8:8 + H, :OP].astype(jnp.bfloat16)   # (H, OP) Linear weight

    # --- F.normalize(input, p=2, dim=1, eps=1e-12): rsqrt form (one EUP op) ---
    x = x_ref[...]                                         # (S, in), unpadded
    ss = jnp.sum(x * x, axis=-1, keepdims=True)
    xn = x * lax.rsqrt(jnp.maximum(ss, 1e-24))

    # --- input contribution to all gates, all timesteps: one MXU matmul (bf16 in) ---
    gi_all = jnp.dot(xn.astype(jnp.bfloat16), wih_ref[...].astype(jnp.bfloat16),
                     preferred_element_type=jnp.float32) + bih          # (S, GW) f32

    # Pre-split per gate outside the loop; fold b_hh's r/z parts in here.
    g_rz = gi_all[:, :2 * H] + bhh[:, :2 * H]              # (S, 2H)
    g_n = gi_all[:, 2 * H:]                                # (S, H)
    bhh_n = bhh[:, 2 * H:]                                 # (1, H)  stays inside r*(...)

    whh_b = whh_ref[...].astype(jnp.bfloat16)              # (H, GW), cast once

    row_ids = lax.broadcasted_iota(jnp.int32, (S, 1), 0)   # (S, 1)
    rr = jnp.zeros((S, H), jnp.float32)                    # register-resident h history
    h = h0                                                 # (1, H) f32 carry

    # --- recurrence, fully unrolled (S is a static Python int) ---
    for t in range(S):
        # One MXU tile per step -> one result pop. f32 accumulate.
        gh = jnp.dot(h.astype(jnp.bfloat16), whh_b,
                     preferred_element_type=jnp.float32)   # (1, GW)
        rz = jax.nn.sigmoid(g_rz[t:t + 1, :] + gh[:, :2 * H])   # r|z in one EUP call
        r = rz[:, :H]
        z = rz[:, H:]
        n = jnp.tanh(g_n[t:t + 1, :] + r * (gh[:, 2 * H:] + bhh_n))
        h = (1.0 - z) * n + z * h
        # Insert this step's h as row t of rr (broadcast + select; off the h-chain).
        rr = jnp.where(row_ids == t, h, rr)

    hn_ref[...] = h

    # --- Linear(hidden -> 1) + Sigmoid over all timesteps, lane-dense output ---
    logits = jnp.dot(rr.astype(jnp.bfloat16), wo,
                     preferred_element_type=jnp.float32) + bo           # (S, OP)
    out_ref[...] = jax.nn.sigmoid(logits)


def gru_forward(x, h0, params):
    """x: (seq, input_size) f32; h0: (num_layers=1, 1, hidden) f32.

    Returns (output, h_n) with output: (seq, 1, output_size), h_n: (1, 1, hidden).
    """
    seq, input_size = x.shape
    hidden = h0.shape[-1]
    out_dim = params["w_out"].shape[0]

    gw = 3 * hidden                         # packed gate width [r | z | n]
    op = 128 * pl.cdiv(out_dim, 128)        # lane-dense output width
    mc = max(gw, op)

    # Weights transposed to (contraction, out) -- no zero padding of HBM operands.
    wih_t = params["w_ih"].T.astype(jnp.float32)   # (input_size, 3*hidden)
    whh_t = params["w_hh"].T.astype(jnp.float32)   # (hidden, 3*hidden)

    # Pack the small operands into one slab -> one DMA instead of five.
    # rows 0..7: [b_ih | b_hh | h0 | b_out | zeros]; rows 8..8+hidden: Linear weight.
    misc = jnp.zeros((8 + hidden, mc), jnp.float32)
    misc = misc.at[0, :gw].set(params["b_ih"])
    misc = misc.at[1, :gw].set(params["b_hh"])
    misc = misc.at[2, :hidden].set(h0.reshape(hidden).astype(jnp.float32))
    misc = misc.at[3, :out_dim].set(params["b_out"])
    misc = misc.at[8:8 + hidden, :out_dim].set(params["w_out"].T)

    vmem = pl.BlockSpec(memory_space=pltpu.MemorySpace.VMEM)
    out, hn = pl.pallas_call(
        gru_kernel,
        out_shape=(
            jax.ShapeDtypeStruct((seq, op), jnp.float32),      # lane-dense output slab
            jax.ShapeDtypeStruct((1, hidden), jnp.float32),    # final hidden (unpadded)
        ),
        in_specs=[vmem] * 4,
        out_specs=(vmem, vmem),
    )(x.astype(jnp.float32), wih_t, whh_t, misc)

    return (out[:, :out_dim].reshape(seq, 1, out_dim),
            hn.reshape(1, 1, hidden))


def gru_reference(x, h0, params):
    """Pure-JAX reference matching the PyTorch module's forward (f32 throughout)."""
    nrm = jnp.sqrt(jnp.sum(x * x, axis=1, keepdims=True))
    xn = x / jnp.maximum(nrm, 1e-12)
    H = h0.shape[-1]
    w_ih, w_hh = params["w_ih"], params["w_hh"]
    b_ih, b_hh = params["b_ih"], params["b_hh"]

    def step(h, xt):
        gi = w_ih @ xt + b_ih
        gh = w_hh @ h + b_hh
        r = jax.nn.sigmoid(gi[:H] + gh[:H])
        z = jax.nn.sigmoid(gi[H:2 * H] + gh[H:2 * H])
        n = jnp.tanh(gi[2 * H:] + r * gh[2 * H:])
        h_new = (1.0 - z) * n + z * h
        return h_new, h_new

    h_last, hs = jax.lax.scan(step, h0.reshape(H), xn)
    out = jax.nn.sigmoid(hs @ params["w_out"].T + params["b_out"])
    return out.reshape(x.shape[0], 1, -1), h_last.reshape(1, 1, H)


def init_params(key, input_size, hidden_size, output_size):
    """Deterministic init mimicking PyTorch's uniform(-1/sqrt(H), 1/sqrt(H))."""
    k = 1.0 / jnp.sqrt(jnp.float32(hidden_size))
    keys = jax.random.split(key, 6)
    return {
        "w_ih": jax.random.uniform(keys[0], (3 * hidden_size, input_size),
                                   jnp.float32, -k, k),
        "w_hh": jax.random.uniform(keys[1], (3 * hidden_size, hidden_size),
                                   jnp.float32, -k, k),
        "b_ih": jax.random.uniform(keys[2], (3 * hidden_size,), jnp.float32, -k, k),
        "b_hh": jax.random.uniform(keys[3], (3 * hidden_size,), jnp.float32, -k, k),
        "w_out": jax.random.uniform(keys[4], (output_size, hidden_size),
                                    jnp.float32, -k, k),
        "b_out": jax.random.uniform(keys[5], (output_size,), jnp.float32, -k, k),
    }


if __name__ == "__main__":
    input_size, hidden_size, output_size, num_layers = 16, 32, 1, 1
    seq_len = 8

    key = jax.random.PRNGKey(0)
    kx, kh, kp = jax.random.split(key, 3)

    x = jax.random.normal(kx, (seq_len, input_size), jnp.float32)
    h0 = jax.random.normal(kh, (num_layers, 1, hidden_size), jnp.float32)  # initHidden()
    params = init_params(kp, input_size, hidden_size, output_size)

    out, hn = jax.jit(gru_forward)(x, h0, params)
    jax.block_until_ready((out, hn))

    assert out.shape == (seq_len, 1, output_size)
    assert hn.shape == (num_layers, 1, hidden_size)

    # bf16 matmul operands (f32 accumulation) compound a few e-3 of rounding over the
    # 8 recurrent steps; 2e-2 still catches any gate-order / layout bug (O(0.1+) errors).
    out_r, hn_r = gru_reference(x, h0, params)
    assert jnp.allclose(out, out_r, atol=2e-2, rtol=2e-2), "output mismatch vs reference"
    assert jnp.allclose(hn, hn_r, atol=2e-2, rtol=2e-2), "hidden mismatch vs reference"

    print("KERNEL_OK")
</pallas_src>

<mosaic_0001>
module attributes {stable_mosaic.version = 11 : i64} {
  func.func @gru_kernel(%arg0: memref<8x16xf32, #tpu.memory_space<vmem>>, %arg1: memref<16x96xf32, #tpu.memory_space<vmem>>, %arg2: memref<32x96xf32, #tpu.memory_space<vmem>>, %arg3: memref<40x128xf32, #tpu.memory_space<vmem>>, %arg4: memref<8x128xf32, #tpu.memory_space<vmem>>, %arg5: memref<1x32xf32, #tpu.memory_space<vmem>>) attributes {dimension_semantics = [], scalar_prefetch = 0 : i64, scratch_operands = 0 : i64, tpu.core_type = #tpu.core_type<tc>} {
    %c0 = arith.constant 0 : index
    %c0_0 = arith.constant 0 : index
    %0 = vector.load %arg3[%c0, %c0_0] : memref<40x128xf32, #tpu.memory_space<vmem>>, vector<1x96xf32>
    %c1 = arith.constant 1 : index
    %c0_1 = arith.constant 0 : index
    %1 = vector.load %arg3[%c1, %c0_1] : memref<40x128xf32, #tpu.memory_space<vmem>>, vector<1x96xf32>
    %c2 = arith.constant 2 : index
    %c0_2 = arith.constant 0 : index
    %2 = vector.load %arg3[%c2, %c0_2] : memref<40x128xf32, #tpu.memory_space<vmem>>, vector<1x32xf32>
    %c3 = arith.constant 3 : index
    %c0_3 = arith.constant 0 : index
    %3 = vector.load %arg3[%c3, %c0_3] : memref<40x128xf32, #tpu.memory_space<vmem>>, vector<1x128xf32>
    %c8 = arith.constant 8 : index
    %c0_4 = arith.constant 0 : index
    %4 = vector.load %arg3[%c8, %c0_4] : memref<40x128xf32, #tpu.memory_space<vmem>>, vector<32x128xf32>
    %5 = arith.truncf %4 : vector<32x128xf32> to vector<32x128xbf16>
    %c0_5 = arith.constant 0 : index
    %c0_6 = arith.constant 0 : index
    %6 = vector.load %arg0[%c0_5, %c0_6] : memref<8x16xf32, #tpu.memory_space<vmem>>, vector<8x16xf32>
    %7 = arith.mulf %6, %6 : vector<8x16xf32>
    %cst = arith.constant dense<0.000000e+00> : vector<8xf32>
    %8 = vector.multi_reduction <add>, %7, %cst [1] : vector<8x16xf32> to vector<8xf32>
    %9 = vector.shape_cast %8 : vector<8xf32> to vector<8x1xf32>
    %cst_7 = arith.constant 1.000000e-24 : f32
    %10 = vector.broadcast %cst_7 : f32 to vector<8x1xf32>
    %11 = arith.maximumf %9, %10 : vector<8x1xf32>
    %12 = math.rsqrt %11 : vector<8x1xf32>
    %13 = vector.broadcast %12 : vector<8x1xf32> to vector<8x16xf32>
    %14 = arith.mulf %6, %13 : vector<8x16xf32>
    %15 = arith.truncf %14 : vector<8x16xf32> to vector<8x16xbf16>
    %c0_8 = arith.constant 0 : index
    %c0_9 = arith.constant 0 : index
    %16 = vector.load %arg1[%c0_8, %c0_9] : memref<16x96xf32, #tpu.memory_space<vmem>>, vector<16x96xf32>
    %17 = arith.truncf %16 : vector<16x96xf32> to vector<16x96xbf16>
    %cst_10 = arith.constant dense<0.000000e+00> : vector<8x96xf32>
    %18 = tpu.matmul %15, %17, %cst_10 {dimension_numbers = #tpu.dot_dimension_numbers<[1], [0], [0], [1], [0, 0, 1, 1], [], []>} : vector<8x16xbf16>, vector<16x96xbf16>, vector<8x96xf32> -> vector<8x96xf32>
    %19 = vector.broadcast %0 : vector<1x96xf32> to vector<8x96xf32>
    %20 = arith.addf %18, %19 : vector<8x96xf32>
    %21 = vector.extract_strided_slice %20 {offsets = [0, 0], sizes = [8, 64], strides = [1, 1]} : vector<8x96xf32> to vector<8x64xf32>
    %22 = vector.extract_strided_slice %1 {offsets = [0, 0], sizes = [1, 64], strides = [1, 1]} : vector<1x96xf32> to vector<1x64xf32>
    %23 = vector.broadcast %22 : vector<1x64xf32> to vector<8x64xf32>
    %24 = arith.addf %21, %23 : vector<8x64xf32>
    %25 = vector.extract_strided_slice %20 {offsets = [0, 64], sizes = [8, 32], strides = [1, 1]} : vector<8x96xf32> to vector<8x32xf32>
    %26 = vector.extract_strided_slice %1 {offsets = [0, 64], sizes = [1, 32], strides = [1, 1]} : vector<1x96xf32> to vector<1x32xf32>
    %c0_11 = arith.constant 0 : index
    %c0_12 = arith.constant 0 : index
    %27 = vector.load %arg2[%c0_11, %c0_12] : memref<32x96xf32, #tpu.memory_space<vmem>>, vector<32x96xf32>
    %28 = arith.truncf %27 : vector<32x96xf32> to vector<32x96xbf16>
    %29 = tpu.iota {dimensions = array<i32: 0>} : vector<8x1xi32>
    %cst_13 = arith.constant 0.000000e+00 : f32
    %30 = vector.broadcast %cst_13 : f32 to vector<8x32xf32>
    %31 = arith.truncf %2 : vector<1x32xf32> to vector<1x32xbf16>
    %cst_14 = arith.constant dense<0.000000e+00> : vector<1x96xf32>
    %32 = tpu.matmul %31, %28, %cst_14 {dimension_numbers = #tpu.dot_dimension_numbers<[1], [0], [0], [1], [0, 0, 1, 1], [], []>} : vector<1x32xbf16>, vector<32x96xbf16>, vector<1x96xf32> -> vector<1x96xf32>
    %33 = vector.extract_strided_slice %24 {offsets = [0, 0], sizes = [1, 64], strides = [1, 1]} : vector<8x64xf32> to vector<1x64xf32>
    %34 = vector.extract_strided_slice %32 {offsets = [0, 0], sizes = [1, 64], strides = [1, 1]} : vector<1x96xf32> to vector<1x64xf32>
    %35 = arith.addf %33, %34 : vector<1x64xf32>
    %36 = arith.negf %35 : vector<1x64xf32>
    %37 = math.exp %36 : vector<1x64xf32>
    %cst_15 = arith.constant 1.000000e+00 : f32
    %38 = vector.broadcast %cst_15 : f32 to vector<1x64xf32>
    %39 = arith.addf %38, %37 : vector<1x64xf32>
    %40 = arith.divf %38, %39 : vector<1x64xf32>
    %41 = vector.extract_strided_slice %40 {offsets = [0, 0], sizes = [1, 32], strides = [1, 1]} : vector<1x64xf32> to vector<1x32xf32>
    %42 = vector.extract_strided_slice %40 {offsets = [0, 32], sizes = [1, 32], strides = [1, 1]} : vector<1x64xf32> to vector<1x32xf32>
    %43 = vector.extract_strided_slice %25 {offsets = [0, 0], sizes = [1, 32], strides = [1, 1]} : vector<8x32xf32> to vector<1x32xf32>
    %44 = vector.extract_strided_slice %32 {offsets = [0, 64], sizes = [1, 32], strides = [1, 1]} : vector<1x96xf32> to vector<1x32xf32>
    %45 = arith.addf %44, %26 : vector<1x32xf32>
    %46 = arith.mulf %41, %45 : vector<1x32xf32>
    %47 = arith.addf %43, %46 : vector<1x32xf32>
    %48 = math.tanh %47 : vector<1x32xf32>
    %cst_16 = arith.constant 1.000000e+00 : f32
    %49 = vector.broadcast %cst_16 : f32 to vector<1x32xf32>
    %50 = arith.subf %49, %42 : vector<1x32xf32>
    %51 = arith.mulf %50, %48 : vector<1x32xf32>
    %52 = arith.mulf %42, %2 : vector<1x32xf32>
    %53 = arith.addf %51, %52 : vector<1x32xf32>
    %c0_i32 = arith.constant 0 : i32
    %54 = vector.broadcast %c0_i32 : i32 to vector<8x1xi32>
    %55 = arith.cmpi eq, %29, %54 : vector<8x1xi32>
    %56 = vector.shape_cast %55 : vector<8x1xi1> to vector<8x1xi1>
    %57 = vector.broadcast %56 : vector<8x1xi1> to vector<8x32xi1>
    %58 = vector.shape_cast %53 : vector<1x32xf32> to vector<1x32xf32>
    %59 = vector.broadcast %58 : vector<1x32xf32> to vector<8x32xf32>
    %60 = arith.select %57, %59, %30 : vector<8x32xi1>, vector<8x32xf32>
    %61 = arith.truncf %53 : vector<1x32xf32> to vector<1x32xbf16>
    %cst_17 = arith.constant dense<0.000000e+00> : vector<1x96xf32>
    %62 = tpu.matmul %61, %28, %cst_17 {dimension_numbers = #tpu.dot_dimension_numbers<[1], [0], [0], [1], [0, 0, 1, 1], [], []>} : vector<1x32xbf16>, vector<32x96xbf16>, vector<1x96xf32> -> vector<1x96xf32>
    %63 = vector.extract_strided_slice %24 {offsets = [1, 0], sizes = [1, 64], strides = [1, 1]} : vector<8x64xf32> to vector<1x64xf32>
    %64 = vector.extract_strided_slice %62 {offsets = [0, 0], sizes = [1, 64], strides = [1, 1]} : vector<1x96xf32> to vector<1x64xf32>
    %65 = arith.addf %63, %64 : vector<1x64xf32>
    %66 = arith.negf %65 : vector<1x64xf32>
    %67 = math.exp %66 : vector<1x64xf32>
    %cst_18 = arith.constant 1.000000e+00 : f32
    %68 = vector.broadcast %cst_18 : f32 to vector<1x64xf32>
    %69 = arith.addf %68, %67 : vector<1x64xf32>
    %70 = arith.divf %68, %69 : vector<1x64xf32>
    %71 = vector.extract_strided_slice %70 {offsets = [0, 0], sizes = [1, 32], strides = [1, 1]} : vector<1x64xf32> to vector<1x32xf32>
    %72 = vector.extract_strided_slice %70 {offsets = [0, 32], sizes = [1, 32], strides = [1, 1]} : vector<1x64xf32> to vector<1x32xf32>
    %73 = vector.extract_strided_slice %25 {offsets = [1, 0], sizes = [1, 32], strides = [1, 1]} : vector<8x32xf32> to vector<1x32xf32>
    %74 = vector.extract_strided_slice %62 {offsets = [0, 64], sizes = [1, 32], strides = [1, 1]} : vector<1x96xf32> to vector<1x32xf32>
    %75 = arith.addf %74, %26 : vector<1x32xf32>
    %76 = arith.mulf %71, %75 : vector<1x32xf32>
    %77 = arith.addf %73, %76 : vector<1x32xf32>
    %78 = math.tanh %77 : vector<1x32xf32>
    %cst_19 = arith.constant 1.000000e+00 : f32
    %79 = vector.broadcast %cst_19 : f32 to vector<1x32xf32>
    %80 = arith.subf %79, %72 : vector<1x32xf32>
    %81 = arith.mulf %80, %78 : vector<1x32xf32>
    %82 = arith.mulf %72, %53 : vector<1x32xf32>
    %83 = arith.addf %81, %82 : vector<1x32xf32>
    %c1_i32 = arith.constant 1 : i32
    %84 = vector.broadcast %c1_i32 : i32 to vector<8x1xi32>
    %85 = arith.cmpi eq, %29, %84 : vector<8x1xi32>
    %86 = vector.shape_cast %85 : vector<8x1xi1> to vector<8x1xi1>
    %87 = vector.broadcast %86 : vector<8x1xi1> to vector<8x32xi1>
    %88 = vector.shape_cast %83 : vector<1x32xf32> to vector<1x32xf32>
    %89 = vector.broadcast %88 : vector<1x32xf32> to vector<8x32xf32>
    %90 = arith.select %87, %89, %60 : vector<8x32xi1>, vector<8x32xf32>
    %91 = arith.truncf %83 : vector<1x32xf32> to vector<1x32xbf16>
    %cst_20 = arith.constant dense<0.000000e+00> : vector<1x96xf32>
    %92 = tpu.matmul %91, %28, %cst_20 {dimension_numbers = #tpu.dot_dimension_numbers<[1], [0], [0], [1], [0, 0, 1, 1], [], []>} : vector<1x32xbf16>, vector<32x96xbf16>, vector<1x96xf32> -> vector<1x96xf32>
    %93 = vector.extract_strided_slice %24 {offsets = [2, 0], sizes = [1, 64], strides = [1, 1]} : vector<8x64xf32> to vector<1x64xf32>
    %94 = vector.extract_strided_slice %92 {offsets = [0, 0], sizes = [1, 64], strides = [1, 1]} : vector<1x96xf32> to vector<1x64xf32>
    %95 = arith.addf %93, %94 : vector<1x64xf32>
    %96 = arith.negf %95 : vector<1x64xf32>
    %97 = math.exp %96 : vector<1x64xf32>
    %cst_21 = arith.constant 1.000000e+00 : f32
    %98 = vector.broadcast %cst_21 : f32 to vector<1x64xf32>
    %99 = arith.addf %98, %97 : vector<1x64xf32>
    %100 = arith.divf %98, %99 : vector<1x64xf32>
    %101 = vector.extract_strided_slice %100 {offsets = [0, 0], sizes = [1, 32], strides = [1, 1]} : vector<1x64xf32> to vector<1x32xf32>
    %102 = vector.extract_strided_slice %100 {offsets = [0, 32], sizes = [1, 32], strides = [1, 1]} : vector<1x64xf32> to vector<1x32xf32>
    %103 = vector.extract_strided_slice %25 {offsets = [2, 0], sizes = [1, 32], strides = [1, 1]} : vector<8x32xf32> to vector<1x32xf32>
    %104 = vector.extract_strided_slice %92 {offsets = [0, 64], sizes = [1, 32], strides = [1, 1]} : vector<1x96xf32> to vector<1x32xf32>
    %105 = arith.addf %104, %26 : vector<1x32xf32>
    %106 = arith.mulf %101, %105 : vector<1x32xf32>
    %107 = arith.addf %103, %106 : vector<1x32xf32>
    %108 = math.tanh %107 : vector<1x32xf32>
    %cst_22 = arith.constant 1.000000e+00 : f32
    %109 = vector.broadcast %cst_22 : f32 to vector<1x32xf32>
    %110 = arith.subf %109, %102 : vector<1x32xf32>
    %111 = arith.mulf %110, %108 : vector<1x32xf32>
    %112 = arith.mulf %102, %83 : vector<1x32xf32>
    %113 = arith.addf %111, %112 : vector<1x32xf32>
    %c2_i32 = arith.constant 2 : i32
    %114 = vector.broadcast %c2_i32 : i32 to vector<8x1xi32>
    %115 = arith.cmpi eq, %29, %114 : vector<8x1xi32>
    %116 = vector.shape_cast %115 : vector<8x1xi1> to vector<8x1xi1>
    %117 = vector.broadcast %116 : vector<8x1xi1> to vector<8x32xi1>
    %118 = vector.shape_cast %113 : vector<1x32xf32> to vector<1x32xf32>
    %119 = vector.broadcast %118 : vector<1x32xf32> to vector<8x32xf32>
    %120 = arith.select %117, %119, %90 : vector<8x32xi1>, vector<8x32xf32>
    %121 = arith.truncf %113 : vector<1x32xf32> to vector<1x32xbf16>
    %cst_23 = arith.constant dense<0.000000e+00> : vector<1x96xf32>
    %122 = tpu.matmul %121, %28, %cst_23 {dimension_numbers = #tpu.dot_dimension_numbers<[1], [0], [0], [1], [0, 0, 1, 1], [], []>} : vector<1x32xbf16>, vector<32x96xbf16>, vector<1x96xf32> -> vector<1x96xf32>
    %123 = vector.extract_strided_slice %24 {offsets = [3, 0], sizes = [1, 64], strides = [1, 1]} : vector<8x64xf32> to vector<1x64xf32>
    %124 = vector.extract_strided_slice %122 {offsets = [0, 0], sizes = [1, 64], strides = [1, 1]} : vector<1x96xf32> to vector<1x64xf32>
    %125 = arith.addf %123, %124 : vector<1x64xf32>
    %126 = arith.negf %125 : vector<1x64xf32>
    %127 = math.exp %126 : vector<1x64xf32>
    %cst_24 = arith.constant 1.000000e+00 : f32
    %128 = vector.broadcast %cst_24 : f32 to vector<1x64xf32>
    %129 = arith.addf %128, %127 : vector<1x64xf32>
    %130 = arith.divf %128, %129 : vector<1x64xf32>
    %131 = vector.extract_strided_slice %130 {offsets = [0, 0], sizes = [1, 32], strides = [1, 1]} : vector<1x64xf32> to vector<1x32xf32>
    %132 = vector.extract_strided_slice %130 {offsets = [0, 32], sizes = [1, 32], strides = [1, 1]} : vector<1x64xf32> to vector<1x32xf32>
    %133 = vector.extract_strided_slice %25 {offsets = [3, 0], sizes = [1, 32], strides = [1, 1]} : vector<8x32xf32> to vector<1x32xf32>
    %134 = vector.extract_strided_slice %122 {offsets = [0, 64], sizes = [1, 32], strides = [1, 1]} : vector<1x96xf32> to vector<1x32xf32>
    %135 = arith.addf %134, %26 : vector<1x32xf32>
    %136 = arith.mulf %131, %135 : vector<1x32xf32>
    %137 = arith.addf %133, %136 : vector<1x32xf32>
    %138 = math.tanh %137 : vector<1x32xf32>
    %cst_25 = arith.constant 1.000000e+00 : f32
    %139 = vector.broadcast %cst_25 : f32 to vector<1x32xf32>
    %140 = arith.subf %139, %132 : vector<1x32xf32>
    %141 = arith.mulf %140, %138 : vector<1x32xf32>
    %142 = arith.mulf %132, %113 : vector<1x32xf32>
    %143 = arith.addf %141, %142 : vector<1x32xf32>
    %c3_i32 = arith.constant 3 : i32
    %144 = vector.broadcast %c3_i32 : i32 to vector<8x1xi32>
    %145 = arith.cmpi eq, %29, %144 : vector<8x1xi32>
    %146 = vector.shape_cast %145 : vector<8x1xi1> to vector<8x1xi1>
    %147 = vector.broadcast %146 : vector<8x1xi1> to vector<8x32xi1>
    %148 = vector.shape_cast %143 : vector<1x32xf32> to vector<1x32xf32>
    %149 = vector.broadcast %148 : vector<1x32xf32> to vector<8x32xf32>
    %150 = arith.select %147, %149, %120 : vector<8x32xi1>, vector<8x32xf32>
    %151 = arith.truncf %143 : vector<1x32xf32> to vector<1x32xbf16>
    %cst_26 = arith.constant dense<0.000000e+00> : vector<1x96xf32>
    %152 = tpu.matmul %151, %28, %cst_26 {dimension_numbers = #tpu.dot_dimension_numbers<[1], [0], [0], [1], [0, 0, 1, 1], [], []>} : vector<1x32xbf16>, vector<32x96xbf16>, vector<1x96xf32> -> vector<1x96xf32>
    %153 = vector.extract_strided_slice %24 {offsets = [4, 0], sizes = [1, 64], strides = [1, 1]} : vector<8x64xf32> to vector<1x64xf32>
    %154 = vector.extract_strided_slice %152 {offsets = [0, 0], sizes = [1, 64], strides = [1, 1]} : vector<1x96xf32> to vector<1x64xf32>
    %155 = arith.addf %153, %154 : vector<1x64xf32>
    %156 = arith.negf %155 : vector<1x64xf32>
    %157 = math.exp %156 : vector<1x64xf32>
    %cst_27 = arith.constant 1.000000e+00 : f32
    %158 = vector.broadcast %cst_27 : f32 to vector<1x64xf32>
    %159 = arith.addf %158, %157 : vector<1x64xf32>
    %160 = arith.divf %158, %159 : vector<1x64xf32>
    %161 = vector.extract_strided_slice %160 {offsets = [0, 0], sizes = [1, 32], strides = [1, 1]} : vector<1x64xf32> to vector<1x32xf32>
    %162 = vector.extract_strided_slice %160 {offsets = [0, 32], sizes = [1, 32], strides = [1, 1]} : vector<1x64xf32> to vector<1x32xf32>
    %163 = vector.extract_strided_slice %25 {offsets = [4, 0], sizes = [1, 32], strides = [1, 1]} : vector<8x32xf32> to vector<1x32xf32>
    %164 = vector.extract_strided_slice %152 {offsets = [0, 64], sizes = [1, 32], strides = [1, 1]} : vector<1x96xf32> to vector<1x32xf32>
    %165 = arith.addf %164, %26 : vector<1x32xf32>
    %166 = arith.mulf %161, %165 : vector<1x32xf32>
    %167 = arith.addf %163, %166 : vector<1x32xf32>
    %168 = math.tanh %167 : vector<1x32xf32>
    %cst_28 = arith.constant 1.000000e+00 : f32
    %169 = vector.broadcast %cst_28 : f32 to vector<1x32xf32>
    %170 = arith.subf %169, %162 : vector<1x32xf32>
    %171 = arith.mulf %170, %168 : vector<1x32xf32>
    %172 = arith.mulf %162, %143 : vector<1x32xf32>
    %173 = arith.addf %171, %172 : vector<1x32xf32>
    %c4_i32 = arith.constant 4 : i32
    %174 = vector.broadcast %c4_i32 : i32 to vector<8x1xi32>
    %175 = arith.cmpi eq, %29, %174 : vector<8x1xi32>
    %176 = vector.shape_cast %175 : vector<8x1xi1> to vector<8x1xi1>
    %177 = vector.broadcast %176 : vector<8x1xi1> to vector<8x32xi1>
    %178 = vector.shape_cast %173 : vector<1x32xf32> to vector<1x32xf32>
    %179 = vector.broadcast %178 : vector<1x32xf32> to vector<8x32xf32>
    %180 = arith.select %177, %179, %150 : vector<8x32xi1>, vector<8x32xf32>
    %181 = arith.truncf %173 : vector<1x32xf32> to vector<1x32xbf16>
    %cst_29 = arith.constant dense<0.000000e+00> : vector<1x96xf32>
    %182 = tpu.matmul %181, %28, %cst_29 {dimension_numbers = #tpu.dot_dimension_numbers<[1], [0], [0], [1], [0, 0, 1, 1], [], []>} : vector<1x32xbf16>, vector<32x96xbf16>, vector<1x96xf32> -> vector<1x96xf32>
    %183 = vector.extract_strided_slice %24 {offsets = [5, 0], sizes = [1, 64], strides = [1, 1]} : vector<8x64xf32> to vector<1x64xf32>
    %184 = vector.extract_strided_slice %182 {offsets = [0, 0], sizes = [1, 64], strides = [1, 1]} : vector<1x96xf32> to vector<1x64xf32>
    %185 = arith.addf %183, %184 : vector<1x64xf32>
    %186 = arith.negf %185 : vector<1x64xf32>
    %187 = math.exp %186 : vector<1x64xf32>
    %cst_30 = arith.constant 1.000000e+00 : f32
    %188 = vector.broadcast %cst_30 : f32 to vector<1x64xf32>
    %189 = arith.addf %188, %187 : vector<1x64xf32>
    %190 = arith.divf %188, %189 : vector<1x64xf32>
    %191 = vector.extract_strided_slice %190 {offsets = [0, 0], sizes = [1, 32], strides = [1, 1]} : vector<1x64xf32> to vector<1x32xf32>
    %192 = vector.extract_strided_slice %190 {offsets = [0, 32], sizes = [1, 32], strides = [1, 1]} : vector<1x64xf32> to vector<1x32xf32>
    %193 = vector.extract_strided_slice %25 {offsets = [5, 0], sizes = [1, 32], strides = [1, 1]} : vector<8x32xf32> to vector<1x32xf32>
    %194 = vector.extract_strided_slice %182 {offsets = [0, 64], sizes = [1, 32], strides = [1, 1]} : vector<1x96xf32> to vector<1x32xf32>
    %195 = arith.addf %194, %26 : vector<1x32xf32>
    %196 = arith.mulf %191, %195 : vector<1x32xf32>
    %197 = arith.addf %193, %196 : vector<1x32xf32>
    %198 = math.tanh %197 : vector<1x32xf32>
    %cst_31 = arith.constant 1.000000e+00 : f32
    %199 = vector.broadcast %cst_31 : f32 to vector<1x32xf32>
    %200 = arith.subf %199, %192 : vector<1x32xf32>
    %201 = arith.mulf %200, %198 : vector<1x32xf32>
    %202 = arith.mulf %192, %173 : vector<1x32xf32>
    %203 = arith.addf %201, %202 : vector<1x32xf32>
    %c5_i32 = arith.constant 5 : i32
    %204 = vector.broadcast %c5_i32 : i32 to vector<8x1xi32>
    %205 = arith.cmpi eq, %29, %204 : vector<8x1xi32>
    %206 = vector.shape_cast %205 : vector<8x1xi1> to vector<8x1xi1>
    %207 = vector.broadcast %206 : vector<8x1xi1> to vector<8x32xi1>
    %208 = vector.shape_cast %203 : vector<1x32xf32> to vector<1x32xf32>
    %209 = vector.broadcast %208 : vector<1x32xf32> to vector<8x32xf32>
    %210 = arith.select %207, %209, %180 : vector<8x32xi1>, vector<8x32xf32>
    %211 = arith.truncf %203 : vector<1x32xf32> to vector<1x32xbf16>
    %cst_32 = arith.constant dense<0.000000e+00> : vector<1x96xf32>
    %212 = tpu.matmul %211, %28, %cst_32 {dimension_numbers = #tpu.dot_dimension_numbers<[1], [0], [0], [1], [0, 0, 1, 1], [], []>} : vector<1x32xbf16>, vector<32x96xbf16>, vector<1x96xf32> -> vector<1x96xf32>
    %213 = vector.extract_strided_slice %24 {offsets = [6, 0], sizes = [1, 64], strides = [1, 1]} : vector<8x64xf32> to vector<1x64xf32>
    %214 = vector.extract_strided_slice %212 {offsets = [0, 0], sizes = [1, 64], strides = [1, 1]} : vector<1x96xf32> to vector<1x64xf32>
    %215 = arith.addf %213, %214 : vector<1x64xf32>
    %216 = arith.negf %215 : vector<1x64xf32>
    %217 = math.exp %216 : vector<1x64xf32>
    %cst_33 = arith.constant 1.000000e+00 : f32
    %218 = vector.broadcast %cst_33 : f32 to vector<1x64xf32>
    %219 = arith.addf %218, %217 : vector<1x64xf32>
    %220 = arith.divf %218, %219 : vector<1x64xf32>
    %221 = vector.extract_strided_slice %220 {offsets = [0, 0], sizes = [1, 32], strides = [1, 1]} : vector<1x64xf32> to vector<1x32xf32>
    %222 = vector.extract_strided_slice %220 {offsets = [0, 32], sizes = [1, 32], strides = [1, 1]} : vector<1x64xf32> to vector<1x32xf32>
    %223 = vector.extract_strided_slice %25 {offsets = [6, 0], sizes = [1, 32], strides = [1, 1]} : vector<8x32xf32> to vector<1x32xf32>
    %224 = vector.extract_strided_slice %212 {offsets = [0, 64], sizes = [1, 32], strides = [1, 1]} : vector<1x96xf32> to vector<1x32xf32>
    %225 = arith.addf %224, %26 : vector<1x32xf32>
    %226 = arith.mulf %221, %225 : vector<1x32xf32>
    %227 = arith.addf %223, %226 : vector<1x32xf32>
    %228 = math.tanh %227 : vector<1x32xf32>
    %cst_34 = arith.constant 1.000000e+00 : f32
    %229 = vector.broadcast %cst_34 : f32 to vector<1x32xf32>
    %230 = arith.subf %229, %222 : vector<1x32xf32>
    %231 = arith.mulf %230, %228 : vector<1x32xf32>
    %232 = arith.mulf %222, %203 : vector<1x32xf32>
    %233 = arith.addf %231, %232 : vector<1x32xf32>
    %c6_i32 = arith.constant 6 : i32
    %234 = vector.broadcast %c6_i32 : i32 to vector<8x1xi32>
    %235 = arith.cmpi eq, %29, %234 : vector<8x1xi32>
    %236 = vector.shape_cast %235 : vector<8x1xi1> to vector<8x1xi1>
    %237 = vector.broadcast %236 : vector<8x1xi1> to vector<8x32xi1>
    %238 = vector.shape_cast %233 : vector<1x32xf32> to vector<1x32xf32>
    %239 = vector.broadcast %238 : vector<1x32xf32> to vector<8x32xf32>
    %240 = arith.select %237, %239, %210 : vector<8x32xi1>, vector<8x32xf32>
    %241 = arith.truncf %233 : vector<1x32xf32> to vector<1x32xbf16>
    %cst_35 = arith.constant dense<0.000000e+00> : vector<1x96xf32>
    %242 = tpu.matmul %241, %28, %cst_35 {dimension_numbers = #tpu.dot_dimension_numbers<[1], [0], [0], [1], [0, 0, 1, 1], [], []>} : vector<1x32xbf16>, vector<32x96xbf16>, vector<1x96xf32> -> vector<1x96xf32>
    %243 = vector.extract_strided_slice %24 {offsets = [7, 0], sizes = [1, 64], strides = [1, 1]} : vector<8x64xf32> to vector<1x64xf32>
    %244 = vector.extract_strided_slice %242 {offsets = [0, 0], sizes = [1, 64], strides = [1, 1]} : vector<1x96xf32> to vector<1x64xf32>
    %245 = arith.addf %243, %244 : vector<1x64xf32>
    %246 = arith.negf %245 : vector<1x64xf32>
    %247 = math.exp %246 : vector<1x64xf32>
    %cst_36 = arith.constant 1.000000e+00 : f32
    %248 = vector.broadcast %cst_36 : f32 to vector<1x64xf32>
    %249 = arith.addf %248, %247 : vector<1x64xf32>
    %250 = arith.divf %248, %249 : vector<1x64xf32>
    %251 = vector.extract_strided_slice %250 {offsets = [0, 0], sizes = [1, 32], strides = [1, 1]} : vector<1x64xf32> to vector<1x32xf32>
    %252 = vector.extract_strided_slice %250 {offsets = [0, 32], sizes = [1, 32], strides = [1, 1]} : vector<1x64xf32> to vector<1x32xf32>
    %253 = vector.extract_strided_slice %25 {offsets = [7, 0], sizes = [1, 32], strides = [1, 1]} : vector<8x32xf32> to vector<1x32xf32>
    %254 = vector.extract_strided_slice %242 {offsets = [0, 64], sizes = [1, 32], strides = [1, 1]} : vector<1x96xf32> to vector<1x32xf32>
    %255 = arith.addf %254, %26 : vector<1x32xf32>
    %256 = arith.mulf %251, %255 : vector<1x32xf32>
    %257 = arith.addf %253, %256 : vector<1x32xf32>
    %258 = math.tanh %257 : vector<1x32xf32>
    %cst_37 = arith.constant 1.000000e+00 : f32
    %259 = vector.broadcast %cst_37 : f32 to vector<1x32xf32>
    %260 = arith.subf %259, %252 : vector<1x32xf32>
    %261 = arith.mulf %260, %258 : vector<1x32xf32>
    %262 = arith.mulf %252, %233 : vector<1x32xf32>
    %263 = arith.addf %261, %262 : vector<1x32xf32>
    %c7_i32 = arith.constant 7 : i32
    %264 = vector.broadcast %c7_i32 : i32 to vector<8x1xi32>
    %265 = arith.cmpi eq, %29, %264 : vector<8x1xi32>
    %266 = vector.shape_cast %265 : vector<8x1xi1> to vector<8x1xi1>
    %267 = vector.broadcast %266 : vector<8x1xi1> to vector<8x32xi1>
    %268 = vector.shape_cast %263 : vector<1x32xf32> to vector<1x32xf32>
    %269 = vector.broadcast %268 : vector<1x32xf32> to vector<8x32xf32>
    %270 = arith.select %267, %269, %240 : vector<8x32xi1>, vector<8x32xf32>
    %c0_38 = arith.constant 0 : index
    %c0_39 = arith.constant 0 : index
    %271 = vector.load %arg5[%c0_38, %c0_39] : memref<1x32xf32, #tpu.memory_space<vmem>>, vector<1x32xf32>
    tpu.vector_store %arg5[%c0_38, %c0_39], %263 {strides = array<i32>} : memref<1x32xf32, #tpu.memory_space<vmem>>, vector<1x32xf32>,
    %272 = arith.truncf %270 : vector<8x32xf32> to vector<8x32xbf16>
    %cst_40 = arith.constant dense<0.000000e+00> : vector<8x128xf32>
    %273 = tpu.matmul %272, %5, %cst_40 {dimension_numbers = #tpu.dot_dimension_numbers<[1], [0], [0], [1], [0, 0, 1, 1], [], []>} : vector<8x32xbf16>, vector<32x128xbf16>, vector<8x128xf32> -> vector<8x128xf32>
    %274 = vector.broadcast %3 : vector<1x128xf32> to vector<8x128xf32>
    %275 = arith.addf %273, %274 : vector<8x128xf32>
    %276 = arith.negf %275 : vector<8x128xf32>
    %277 = math.exp %276 : vector<8x128xf32>
    %cst_41 = arith.constant 1.000000e+00 : f32
    %278 = vector.broadcast %cst_41 : f32 to vector<8x128xf32>
    %279 = arith.addf %278, %277 : vector<8x128xf32>
    %280 = arith.divf %278, %279 : vector<8x128xf32>
    %c0_42 = arith.constant 0 : index
    %c0_43 = arith.constant 0 : index
    %281 = vector.load %arg4[%c0_42, %c0_43] : memref<8x128xf32, #tpu.memory_space<vmem>>, vector<8x128xf32>
    tpu.vector_store %arg4[%c0_42, %c0_43], %280 {strides = array<i32>} : memref<8x128xf32, #tpu.memory_space<vmem>>, vector<8x128xf32>,
    return
  }
}

</mosaic_0001>

<bundles_post_ra>
// kernel: gru_forward.1
= control target key start
LH: loop header
LB: loop body
LE: loop exit
PB: predicated region body
PF: predicated region fallthrough
CT: control target
= control target key end

     0   :  { %vm33_vm0 = vcmask 130048   ;;  %v1116_v4 = vmov 0.0   ;;  %vm1117_vm1 = vmmov 0   ;;  %s1374_s0 = inlined_call_operand.vmem [shape: f32[8,16], index: 0, kind: input, shape index: {}]   ;;  %s1375_s1 = inlined_call_operand.vmem [shape: f32[16,96], index: 1, kind: input, shape index: {}]   ;;  %s1376_s2 = inlined_call_operand.vmem [shape: f32[32,96], index: 2, kind: input, shape index: {}]   ;;  %s1377_s3 = inlined_call_operand.vmem [shape: f32[40,128], index: 3, kind: input, shape index: {}]   ;;  %s1378_s4 = inlined_call_operand.vmem [shape: f32[8,128], index: 4, kind: output, shape index: {0}]   ;;  %s1379_s5 = inlined_call_operand.hbm [shape: f32[1,32], index: 5, kind: output, shape index: {1}]  }
   0x1   :  { %v31_v0 = vld [vmem:[%s1374_s0] sm:$0xff]  ;;  %v97_v2 = vld [vmem:[%s1376_s2 + $0x8] sm:$0xff]  ;;  %960 = vmatprep.subr.bf16.mxu1 %v1116_v4  ;;  %v98_v6 = vld [vmem:[%s1376_s2 + $0x10] sm:$0xff]  ;;  %964 = vmatprep.mubr.msk.bf16.mxu1 %vm1117_vm1, %v1116_v4 }
   0x2   :  { %v96_v1 = vld [vmem:[%s1376_s2] sm:$0xff]  ;;  %v32_v3 = vmul.f32 %v31_v0, %v31_v0  ;;  %v99_v7 = vld [vmem:[%s1376_s2 + $0x18] sm:$0xff]  ;;  %954 = vmatprep.subr.bf16.mxu0 %v1116_v4  ;;  %956 = vmatprep.mubr.msk.bf16.mxu0 %vm1117_vm1, %v1116_v4 }
   0x3   :  { %v1162_v5 = vpack.c.bf16 %v97_v2, %v96_v1 }
   0x4   :  { %11 = vsyncpa [#allocation3], 0  ;;  %v34_v8 = vsel %vm33_vm0, %v32_v3, 0.0  ;;  %v1177_v9 = vpack.c.bf16 %v99_v7, %v98_v6  ;;  %v1182_v10 = vld [vmem:[%s1377_s3 + $0x2] sm:$0x1]  ;;  %vm105_vm2 = vcmask 261120   ;;  %v91_v26 = vlaneseq }
   0x5   :  { %961 = vmatpush3.bf16.msra.mxu1 %v1162_v5  ;;  %35 = vadd.xlane.f32.xlu0 %v34_v8  ;;  %v104_v11 = vpack.c.bf16 %v1182_v10, %v1182_v10  ;;  %v41_v12 = vld [vmem:[%s1375_s1] sm:$0xff]  ;;  %v42_v13 = vld [vmem:[%s1375_s1 + $0x8] sm:$0xff]  ;;  %s1118_s8 = smov 64   ;;  %s1119_s11 = smov 96   ;;  %vm826_vm11 = vcmask 261127  }
   0x6   :  { %962 = vmatprep.subr.bf16.mxu1 %v1116_v4  ;;  %v43_v14 = vpack.c.bf16 %v42_v13, %v41_v12  ;;  %v1213_v20 = vld [vmem:[%s1377_s3 + $0x1] sm:$0x1]  ;;  %v1217_v27 = vshrl.u32 %v91_v26, 7  ;;  %v904_v29 = vld [vmem:[%s1377_s3] ss:$0 sm:$0xff]  ;;  %s1120_s12 = smov 32  }
   0x7   :  { %s1121_s21 = smov [#allocation2]  }
   0x8   :  { %955 = vmatpush3.bf16.msra.mxu0 %v43_v14  ;;  %v93_v28 = vsub.s32 0, %v1217_v27  ;;  %vm180_vm3 = vcmp.eq.s32.totalorder %v1217_v27, 0  ;;  %vm269_vm4 = vcmp.eq.s32.totalorder %v1217_v27, 1  ;;  %vm360_vm5 = vcmp.eq.s32.totalorder %v1217_v27, 2  ;;  %s894_s22 = sshll.u32 %s1121_s21, 4  ;;  %s895_s22 = int_to_ptr.vmem [resolvable:$true] %s894_s22 }
   0x9   :  { %963 = vmatpush3.bf16.msra.mxu1 %v1177_v9  ;;  %968 = vmatprep.subr.bf16.mxu0 %v1116_v4  ;;  %vm450_vm6 = vcmp.eq.s32.totalorder %v1217_v27, 3  ;;  %vm542_vm7 = vcmp.eq.s32.totalorder %v1217_v27, 4  ;;  %vm632_vm8 = vcmp.eq.s32.totalorder %v1217_v27, 5  ;;  %vm724_vm9 = vcmp.eq.s32.totalorder %v1217_v27, 6  ;;  %s1092_s23 = scalar_lea.vmem %s895_s22, 16  ;;  %s1096_s24 = scalar_lea.vmem %s895_s22, 32 }
   0xa   :  { %976 = vmatprep.subr.bf16.mxu1 %v1116_v4  ;;  %v94_v30 = vrot.slane %v1213_v20, %v93_v28  ;;  %vm814_vm10 = vcmp.eq.s32.totalorder %v1217_v27, 7  ;;  %p1093_p0 = scmp.ne.s32.totalorder %s895_s22, %s1092_s23  ;;  %p1097_p1 = scmp.lt.s32.totalorder %s895_s22, %s895_s22 }
   0xb   :  { %p1098_p2 = scmp.lt.s32.totalorder %s1096_s24, %s1092_s23 }
   0xc   :  { %965 = vmatmul.mubr.msk.bf16.vlgmr.msra.gmra.mrb[0].mxu1 %vm105_vm2, %v104_v11 }
   0xd   :  { %977 = vmatpush3.bf16.msra.mxu1 %v1162_v5  ;;  %980 = vmatprep.mubr.msk.bf16.mxu1 %vm1117_vm1, %v1116_v4  ;;  %p1099_p3 = por %p1098_p2, %p1097_p1 }
   0xe   :  { %978 = vmatprep.subr.bf16.mxu1 %v1116_v4 }
   0xf   :  { %p1100_p4 = pnand %p1099_p3, %p1093_p0 }
  0x11   :  { %979 = vmatpush3.bf16.msra.mxu1 %v1177_v9 }
  0x12   :  { %992 = vmatprep.subr.bf16.mxu1 %v1116_v4 }
  0x92   :  { %v36_v15 = vpop.xlane.xlu0 %35 }
  0x93   :  { %v37_v16 = vmax.f32 %v36_v15, 1e-24  ;;  %v274_v15 = vsub.s32 1, %v1217_v27 }
  0x95   :  { %1038 = vrsqrt.f32 %v37_v16 }
  0x9f   :  { %v1039_v17 = vpop.eup %1038 }
  0xa0   :  { %v39_v18 = vmul.f32 %v1039_v17, %v31_v0 }
  0xa2   :  { %v40_v19 = vpack.c.bf16 %v39_v18, %v39_v18 }
  0xa4   :  { %957 = vmatmul.mubr.msk.bf16.vlgmr.msra.gmra.mrb[0].mxu0 %vm33_vm0, %v40_v19 }
  0xa5   :  { %969 = vmatpush3.bf16.msra.mxu0 %v1162_v5  ;;  %972 = vmatprep.mubr.msk.bf16.mxu0 %vm1117_vm1, %v1116_v4 }
  0xa6   :  { %970 = vmatprep.subr.bf16.mxu0 %v1116_v4 }
  0xa9   :  { %971 = vmatpush3.bf16.msra.mxu0 %v1177_v9 }
  0xaa   :  { %984 = vmatprep.subr.bf16.mxu0 %v1116_v4 }
  0xdf   :  { %v143_v21 = vpop.f32.mrb[0].mxu1 }
  0xe0   :  { %v156_v22 = vadd.f32 %v143_v21, %v1213_v20  ;;  %v966_v23 = vpop.f32.mrb[1].mxu1 }
  0xe1   :  { %v146_v24 = vpop.f32.mrb[2].mxu1 }
  0xe2   :  { %v967_v25 = vpop.f32.mrb[3].mxu1  ;;  %158 = vrot.lane.b32.xlu0 %v156_v22, %s1118_s8 }
 0x154   :  { %v159_v41 = vpop.permute.xlu0 %158 }
 0x177   :  { %v85_v31 = vpop.f32.mrb[0].mxu0 }
 0x178   :  { %v1226_v32 = vadd.f32 %v904_v29, %v85_v31  ;;  %v958_v33 = vpop.f32.mrb[1].mxu0 }
 0x179   :  { %v88_v34 = vpop.f32.mrb[2].mxu0 }
 0x17a   :  { %v1229_v35 = vadd.f32 %v94_v30, %v1226_v32  ;;  %v959_v36 = vpop.f32.mrb[3].mxu0 }
 0x17c   :  { %v149_v37 = vadd.f32 %v143_v21, %v1229_v35 }
 0x17e   :  { %v907_v38 = vmul.f32 -1.442695, %v149_v37 }
 0x180   :  { %1040 = vpow2.f32 %v907_v38 }
 0x18a   :  { %v1041_v39 = vpop.eup %1040 }
 0x18b   :  { %v153_v40 = vadd.f32 1.0, %v1041_v39 }
 0x18d   :  { %1042 = vrcp.f32 %v153_v40 }
 0x197   :  { %v1043_v42 = vpop.eup %1042 }
 0x198   :  { %v161_v43 = vmul.f32 %v1043_v42, %v159_v41  ;;  %v168_v48 = vsub.f32 1.0, %v1043_v42 }
 0x19a   :  { %163 = vrot.lane.b32.xlu1 %v161_v43, %s1118_s8 }
 0x20c   :  { %v164_v44 = vpop.permute.xlu1 %163 }
 0x20d   :  { %v166_v45 = vadd.f32 %v164_v44, %v1226_v32 }
 0x20f   :  { %1044 = vtanh.f32 %v166_v45 }
 0x219   :  { %v1045_v46 = vpop.eup %1044 }
 0x21a   :  { %170 = vrot.lane.b32.xlu1 %v1045_v46, %s1119_s11 }
 0x21e   :  { %175 = vrot.lane.b32.xlu1 %v1182_v10, %s1120_s12 }
 0x28c   :  { %v171_v47 = vpop.permute.xlu1 %170 }
 0x28d   :  { %v173_v50 = vmul.f32 %v171_v47, %v168_v48 }
 0x290   :  { %v176_v49 = vpop.permute.xlu1 %175 }
 0x291   :  { %v178_v51 = vmul.f32 %v1043_v42, %v176_v49 }
 0x293   :  { %v179_v52 = vadd.f32 %v178_v51, %v173_v50  ;;  %v365_v50 = vsub.s32 2, %v1217_v27 }
 0x295   :  { %v188_v53 = vpack.c.bf16 %v179_v52, %v179_v52  ;;  %v265_v12 = vrot.slane %v179_v52, 7  ;;  %v186_v17 = vrot.slane %v179_v52, %v93_v28 }
 0x297   :  { %190 = vrot.lane.b32.xlu1 %v188_v53, %s1119_s11  ;;  %v187_v22 = vsel %vm180_vm3, %v186_v17, 0.0 }
 0x309   :  { %v191_v54 = vpop.permute.xlu1 %190 }
 0x30a   :  { %973 = vmatmul.mubr.msk.bf16.vlgmr.msra.gmra.mrb[4].mxu0 %vm105_vm2, %v191_v54 }
 0x30b   :  { %985 = vmatpush3.bf16.msra.mxu0 %v1162_v5  ;;  %988 = vmatprep.mubr.msk.bf16.mxu0 %vm1117_vm1, %v1116_v4 }
 0x30c   :  { %986 = vmatprep.subr.bf16.mxu0 %v1116_v4 }
 0x30f   :  { %987 = vmatpush3.bf16.msra.mxu0 %v1177_v9 }
 0x310   :  { %1000 = vmatprep.subr.bf16.mxu0 %v1116_v4 }
 0x3dd   :  { %v229_v55 = vpop.f32.mrb[4].mxu0 }
 0x3de   :  { %v245_v56 = vadd.f32 %v229_v55, %v1213_v20  ;;  %v974_v57 = vpop.f32.mrb[5].mxu0  ;;  %v236_v61 = vrot.slane %v229_v55, 7 }
 0x3df   :  { %v232_v58 = vpop.f32.mrb[6].mxu0 }
 0x3e0   :  { %v247_v59 = vrot.slane %v245_v56, 7  ;;  %v975_v60 = vpop.f32.mrb[7].mxu0  ;;  %v238_v62 = vadd.f32 %v236_v61, %v1229_v35 }
 0x3e2   :  { %248 = vrot.lane.b32.xlu1 %v247_v59, %s1118_s8  ;;  %v909_v63 = vmul.f32 -1.442695, %v238_v62 }
 0x3e4   :  { %1046 = vpow2.f32 %v909_v63 }
 0x3ee   :  { %v1047_v0 = vpop.eup %1046 }
 0x3ef   :  { %v242_v1 = vadd.f32 1.0, %v1047_v0 }
 0x3f1   :  { %1048 = vrcp.f32 %v242_v1 }
 0x3fb   :  { %v1049_v2 = vpop.eup %1048 }
 0x3fc   :  { %v258_v11 = vsub.f32 1.0, %v1049_v2  ;;  %v267_v14 = vmul.f32 %v1049_v2, %v265_v12 }
 0x454   :  { %v249_v3 = vpop.permute.xlu1 %248 }
 0x455   :  { %v251_v6 = vmul.f32 %v1049_v2, %v249_v3 }
 0x457   :  { %253 = vrot.lane.b32.xlu1 %v251_v6, %s1118_s8 }
 0x4c9   :  { %v254_v7 = vpop.permute.xlu1 %253 }
 0x4ca   :  { %v256_v8 = vadd.f32 %v254_v7, %v1226_v32 }
 0x4cc   :  { %1050 = vtanh.f32 %v256_v8 }
 0x4d6   :  { %v1051_v10 = vpop.eup %1050 }
 0x4d7   :  { %260 = vrot.lane.b32.xlu1 %v1051_v10, %s1119_s11 }
 0x549   :  { %v261_v13 = vpop.permute.xlu1 %260 }
 0x54a   :  { %v263_v16 = vmul.f32 %v261_v13, %v258_v11 }
 0x54c   :  { %v268_v18 = vadd.f32 %v267_v14, %v263_v16 }
 0x54e   :  { %v275_v19 = vrot.slane %v268_v18, %v274_v15  ;;  %v277_v21 = vpack.c.bf16 %v268_v18, %v268_v18  ;;  %v356_v47 = vrot.slane %v268_v18, 7  ;;  %v455_v18 = vsub.s32 3, %v1217_v27 }
 0x550   :  { %v276_v23 = vsel %vm269_vm4, %v275_v19, %v187_v22  ;;  %v279_v24 = vshrl.u32 %v277_v21, 16 }
 0x552   :  { %281 = vrot.lane.b32.xlu0 %v279_v24, %s1119_s11 }
 0x5c4   :  { %v282_v25 = vpop.permute.xlu0 %281 }
 0x5c5   :  { %981 = vmatmul.mubr.msk.bf16.vlgmr.msra.gmra.mrb[4].mxu1 %vm105_vm2, %v282_v25 }
 0x5c6   :  { %993 = vmatpush3.bf16.msra.mxu1 %v1162_v5  ;;  %996 = vmatprep.mubr.msk.bf16.mxu1 %vm1117_vm1, %v1116_v4 }
 0x5c7   :  { %994 = vmatprep.subr.bf16.mxu1 %v1116_v4 }
 0x5ca   :  { %995 = vmatpush3.bf16.msra.mxu1 %v1177_v9 }
 0x5cb   :  { %1008 = vmatprep.subr.bf16.mxu1 %v1116_v4 }
 0x698   :  { %v320_v26 = vpop.f32.mrb[4].mxu1 }
 0x699   :  { %v336_v28 = vadd.f32 %v320_v26, %v1213_v20  ;;  %v982_v29 = vpop.f32.mrb[5].mxu1  ;;  %v327_v34 = vrot.slane %v320_v26, 6 }
 0x69a   :  { %v323_v30 = vpop.f32.mrb[6].mxu1 }
 0x69b   :  { %v338_v31 = vrot.slane %v336_v28, 6  ;;  %v983_v33 = vpop.f32.mrb[7].mxu1  ;;  %v329_v36 = vadd.f32 %v327_v34, %v1229_v35 }
 0x69d   :  { %339 = vrot.lane.b32.xlu1 %v338_v31, %s1118_s8  ;;  %v911_v37 = vmul.f32 -1.442695, %v329_v36 }
 0x69f   :  { %1052 = vpow2.f32 %v911_v37 }
 0x6a9   :  { %v1053_v38 = vpop.eup %1052 }
 0x6aa   :  { %v333_v39 = vadd.f32 1.0, %v1053_v38 }
 0x6ac   :  { %1054 = vrcp.f32 %v333_v39 }
 0x6b6   :  { %v1055_v40 = vpop.eup %1054 }
 0x6b7   :  { %v349_v46 = vsub.f32 1.0, %v1055_v40  ;;  %v358_v49 = vmul.f32 %v1055_v40, %v356_v47 }
 0x70f   :  { %v340_v41 = vpop.permute.xlu1 %339 }
 0x710   :  { %v342_v42 = vmul.f32 %v1055_v40, %v340_v41 }
 0x712   :  { %344 = vrot.lane.b32.xlu0 %v342_v42, %s1118_s8 }
 0x784   :  { %v345_v43 = vpop.permute.xlu0 %344 }
 0x785   :  { %v347_v44 = vadd.f32 %v345_v43, %v1226_v32 }
 0x787   :  { %1056 = vtanh.f32 %v347_v44 }
 0x791   :  { %v1057_v45 = vpop.eup %1056 }
 0x792   :  { %351 = vrot.lane.b32.xlu1 %v1057_v45, %s1119_s11 }
 0x804   :  { %v352_v48 = vpop.permute.xlu1 %351 }
 0x805   :  { %v354_v51 = vmul.f32 %v352_v48, %v349_v46 }
 0x807   :  { %v359_v52 = vadd.f32 %v358_v49, %v354_v51 }
 0x809   :  { %v366_v53 = vrot.slane %v359_v52, %v365_v50  ;;  %v368_v54 = vpack.c.bf16 %v359_v52, %v359_v52  ;;  %v446_v15 = vrot.slane %v359_v52, 7  ;;  %v547_v52 = vsub.s32 4, %v1217_v27 }
 0x80b   :  { %v367_v55 = vsel %vm360_vm5, %v366_v53, %v276_v23  ;;  %v370_v56 = vrot.slane %v368_v54, 1 }
 0x80d   :  { %371 = vrot.lane.b32.xlu0 %v370_v56, %s1119_s11 }
 0x87f   :  { %v372_v57 = vpop.permute.xlu0 %371 }
 0x880   :  { %989 = vmatmul.mubr.msk.bf16.vlgmr.msra.gmra.mrb[8].mxu0 %vm105_vm2, %v372_v57 }
 0x881   :  { %1001 = vmatpush3.bf16.msra.mxu0 %v1162_v5  ;;  %1004 = vmatprep.mubr.msk.bf16.mxu0 %vm1117_vm1, %v1116_v4 }
 0x882   :  { %1002 = vmatprep.subr.bf16.mxu0 %v1116_v4 }
 0x885   :  { %1003 = vmatpush3.bf16.msra.mxu0 %v1177_v9 }
 0x886   :  { %1016 = vmatprep.subr.bf16.mxu0 %v1116_v4 }
 0x953   :  { %v410_v58 = vpop.f32.mrb[8].mxu0 }
 0x954   :  { %v426_v59 = vadd.f32 %v410_v58, %v1213_v20  ;;  %v990_v60 = vpop.f32.mrb[9].mxu0  ;;  %v417_v0 = vrot.slane %v410_v58, 5 }
 0x955   :  { %v413_v61 = vpop.f32.mrb[10].mxu0 }
 0x956   :  { %v428_v62 = vrot.slane %v426_v59, 5  ;;  %v991_v63 = vpop.f32.mrb[11].mxu0  ;;  %v419_v1 = vadd.f32 %v417_v0, %v1229_v35 }
 0x958   :  { %429 = vrot.lane.b32.xlu1 %v428_v62, %s1118_s8  ;;  %v913_v2 = vmul.f32 -1.442695, %v419_v1 }
 0x95a   :  { %1058 = vpow2.f32 %v913_v2 }
 0x964   :  { %v1059_v3 = vpop.eup %1058 }
 0x965   :  { %v423_v6 = vadd.f32 1.0, %v1059_v3 }
 0x967   :  { %1060 = vrcp.f32 %v423_v6 }
 0x971   :  { %v1061_v7 = vpop.eup %1060 }
 0x972   :  { %v439_v14 = vsub.f32 1.0, %v1061_v7  ;;  %v448_v17 = vmul.f32 %v1061_v7, %v446_v15 }
 0x9ca   :  { %v430_v8 = vpop.permute.xlu1 %429 }
 0x9cb   :  { %v432_v10 = vmul.f32 %v1061_v7, %v430_v8 }
 0x9cd   :  { %434 = vrot.lane.b32.xlu0 %v432_v10, %s1118_s8 }
 0xa3f   :  { %v435_v11 = vpop.permute.xlu0 %434 }
 0xa40   :  { %v437_v12 = vadd.f32 %v435_v11, %v1226_v32 }
 0xa42   :  { %1062 = vtanh.f32 %v437_v12 }
 0xa4c   :  { %v1063_v13 = vpop.eup %1062 }
 0xa4d   :  { %441 = vrot.lane.b32.xlu1 %v1063_v13, %s1119_s11 }
 0xabf   :  { %v442_v16 = vpop.permute.xlu1 %441 }
 0xac0   :  { %v444_v19 = vmul.f32 %v442_v16, %v439_v14 }
 0xac2   :  { %v449_v21 = vadd.f32 %v448_v17, %v444_v19 }
 0xac4   :  { %v456_v22 = vrot.slane %v449_v21, %v455_v18  ;;  %v458_v23 = vpack.c.bf16 %v449_v21, %v449_v21  ;;  %v538_v49 = vrot.slane %v449_v21, 7  ;;  %v637_v18 = vsub.s32 5, %v1217_v27 }
 0xac6   :  { %v457_v24 = vsel %vm450_vm6, %v456_v22, %v367_v55  ;;  %v460_v25 = vshrl.u32 %v458_v23, 16 }
 0xac8   :  { %v462_v26 = vrot.slane %v460_v25, 1 }
 0xaca   :  { %463 = vrot.lane.b32.xlu0 %v462_v26, %s1119_s11 }
 0xb3c   :  { %v464_v28 = vpop.permute.xlu0 %463 }
 0xb3d   :  { %997 = vmatmul.mubr.msk.bf16.vlgmr.msra.gmra.mrb[8].mxu1 %vm105_vm2, %v464_v28 }
 0xb3e   :  { %1009 = vmatpush3.bf16.msra.mxu1 %v1162_v5  ;;  %1012 = vmatprep.mubr.msk.bf16.mxu1 %vm1117_vm1, %v1116_v4 }
 0xb3f   :  { %1010 = vmatprep.subr.bf16.mxu1 %v1116_v4 }
 0xb42   :  { %1011 = vmatpush3.bf16.msra.mxu1 %v1177_v9 }
 0xb43   :  { %1024 = vmatprep.subr.bf16.mxu1 %v1116_v4 }
 0xc10   :  { %v502_v29 = vpop.f32.mrb[8].mxu1 }
 0xc11   :  { %v518_v30 = vadd.f32 %v502_v29, %v1213_v20  ;;  %v998_v31 = vpop.f32.mrb[9].mxu1  ;;  %v509_v37 = vrot.slane %v502_v29, 4 }
 0xc12   :  { %v505_v33 = vpop.f32.mrb[10].mxu1 }
 0xc13   :  { %v520_v34 = vrot.slane %v518_v30, 4  ;;  %v999_v36 = vpop.f32.mrb[11].mxu1  ;;  %v511_v38 = vadd.f32 %v509_v37, %v1229_v35 }
 0xc15   :  { %521 = vrot.lane.b32.xlu1 %v520_v34, %s1118_s8  ;;  %v915_v39 = vmul.f32 -1.442695, %v511_v38 }
 0xc17   :  { %1064 = vpow2.f32 %v915_v39 }
 0xc21   :  { %v1065_v40 = vpop.eup %1064 }
 0xc22   :  { %v515_v41 = vadd.f32 1.0, %v1065_v40 }
 0xc24   :  { %1066 = vrcp.f32 %v515_v41 }
 0xc2e   :  { %v1067_v42 = vpop.eup %1066 }
 0xc2f   :  { %v531_v48 = vsub.f32 1.0, %v1067_v42  ;;  %v540_v51 = vmul.f32 %v1067_v42, %v538_v49 }
 0xc87   :  { %v522_v43 = vpop.permute.xlu1 %521 }
 0xc88   :  { %v524_v44 = vmul.f32 %v1067_v42, %v522_v43 }
 0xc8a   :  { %526 = vrot.lane.b32.xlu0 %v524_v44, %s1118_s8 }
 0xcfc   :  { %v527_v45 = vpop.permute.xlu0 %526 }
 0xcfd   :  { %v529_v46 = vadd.f32 %v527_v45, %v1226_v32 }
 0xcff   :  { %1068 = vtanh.f32 %v529_v46 }
 0xd09   :  { %v1069_v47 = vpop.eup %1068 }
 0xd0a   :  { %533 = vrot.lane.b32.xlu1 %v1069_v47, %s1119_s11 }
 0xd7c   :  { %v534_v50 = vpop.permute.xlu1 %533 }
 0xd7d   :  { %v536_v53 = vmul.f32 %v534_v50, %v531_v48 }
 0xd7f   :  { %v541_v54 = vadd.f32 %v540_v51, %v536_v53 }
 0xd81   :  { %v548_v55 = vrot.slane %v541_v54, %v547_v52  ;;  %v550_v56 = vpack.c.bf16 %v541_v54, %v541_v54  ;;  %v628_v15 = vrot.slane %v541_v54, 7  ;;  %v729_v52 = vsub.s32 6, %v1217_v27 }
 0xd83   :  { %v552_v57 = vrot.slane %v550_v56, 2  ;;  %v549_v58 = vsel %vm542_vm7, %v548_v55, %v457_v24 }
 0xd85   :  { %553 = vrot.lane.b32.xlu0 %v552_v57, %s1119_s11 }
 0xdf7   :  { %v554_v59 = vpop.permute.xlu0 %553 }
 0xdf8   :  { %1005 = vmatmul.mubr.msk.bf16.vlgmr.msra.gmra.mrb[12].mxu0 %vm105_vm2, %v554_v59 }
 0xdf9   :  { %1017 = vmatpush3.bf16.msra.mxu0 %v1162_v5  ;;  %1020 = vmatprep.mubr.msk.bf16.mxu0 %vm1117_vm1, %v1116_v4 }
 0xdfa   :  { %1018 = vmatprep.subr.bf16.mxu0 %v1116_v4 }
 0xdfd   :  { %1019 = vmatpush3.bf16.msra.mxu0 %v1177_v9 }
 0xecb   :  { %v592_v60 = vpop.f32.mrb[12].mxu0 }
 0xecc   :  { %v608_v61 = vadd.f32 %v592_v60, %v1213_v20  ;;  %v1006_v62 = vpop.f32.mrb[13].mxu0  ;;  %v599_v2 = vrot.slane %v592_v60, 3 }
 0xecd   :  { %v595_v63 = vpop.f32.mrb[14].mxu0 }
 0xece   :  { %v610_v0 = vrot.slane %v608_v61, 3  ;;  %v1007_v1 = vpop.f32.mrb[15].mxu0  ;;  %v601_v3 = vadd.f32 %v599_v2, %v1229_v35 }
 0xed0   :  { %611 = vrot.lane.b32.xlu1 %v610_v0, %s1118_s8  ;;  %v917_v5 = vmul.f32 -1.442695, %v601_v3 }
 0xed2   :  { %1070 = vpow2.f32 %v917_v5 }
 0xedc   :  { %v1071_v6 = vpop.eup %1070 }
 0xedd   :  { %v605_v7 = vadd.f32 1.0, %v1071_v6 }
 0xedf   :  { %1072 = vrcp.f32 %v605_v7 }
 0xee9   :  { %v1073_v8 = vpop.eup %1072 }
 0xeea   :  { %v621_v14 = vsub.f32 1.0, %v1073_v8  ;;  %v630_v17 = vmul.f32 %v1073_v8, %v628_v15  ;;  %v28_v15 = vld [vmem:[%s1377_s3 + $0x20] sm:$0xff] }
 0xf42   :  { %v612_v10 = vpop.permute.xlu1 %611 }
 0xf43   :  { %v614_v9 = vmul.f32 %v1073_v8, %v612_v10 }
 0xf45   :  { %616 = vrot.lane.b32.xlu0 %v614_v9, %s1118_s8 }
 0xfb7   :  { %v617_v11 = vpop.permute.xlu0 %616 }
 0xfb8   :  { %v619_v12 = vadd.f32 %v617_v11, %v1226_v32 }
 0xfba   :  { %1074 = vtanh.f32 %v619_v12  ;;  %v25_v12 = vld [vmem:[%s1377_s3 + $0x8] sm:$0xff] }
 0xfc4   :  { %v1075_v13 = vpop.eup %1074 }
 0xfc5   :  { %623 = vrot.lane.b32.xlu1 %v1075_v13, %s1119_s11 }
0x1037   :  { %v624_v16 = vpop.permute.xlu1 %623 }
0x1038   :  { %v626_v19 = vmul.f32 %v624_v16, %v621_v14 }
0x103a   :  { %v631_v21 = vadd.f32 %v630_v17, %v626_v19 }
0x103c   :  { %v638_v22 = vrot.slane %v631_v21, %v637_v18  ;;  %v640_v23 = vpack.c.bf16 %v631_v21, %v631_v21  ;;  %v720_v49 = vrot.slane %v631_v21, 7 }
0x103e   :  { %v642_v24 = vshrl.u32 %v640_v23, 16  ;;  %v639_v25 = vsel %vm632_vm8, %v638_v22, %v549_v58  ;;  %v819_v22 = vsub.s32 7, %v1217_v27 }
0x1040   :  { %v644_v26 = vrot.slane %v642_v24, 2 }
0x1042   :  { %645 = vrot.lane.b32.xlu0 %v644_v26, %s1119_s11 }
0x10b4   :  { %v646_v28 = vpop.permute.xlu0 %645 }
0x10b5   :  { %1013 = vmatmul.mubr.msk.bf16.vlgmr.msra.gmra.mrb[12].mxu1 %vm105_vm2, %v646_v28 }
0x10b6   :  { %1028 = vmatprep.mubr.msk.bf16.mxu1 %vm1117_vm1, %v1116_v4 }
0x1188   :  { %v684_v29 = vpop.f32.mrb[12].mxu1 }
0x1189   :  { %v700_v30 = vadd.f32 %v684_v29, %v1213_v20  ;;  %v1014_v31 = vpop.f32.mrb[13].mxu1  ;;  %v691_v37 = vrot.slane %v684_v29, 2 }
0x118a   :  { %v687_v33 = vpop.f32.mrb[14].mxu1 }
0x118b   :  { %v702_v34 = vrot.slane %v700_v30, 2  ;;  %v1015_v36 = vpop.f32.mrb[15].mxu1  ;;  %v693_v38 = vadd.f32 %v691_v37, %v1229_v35 }
0x118d   :  { %703 = vrot.lane.b32.xlu1 %v702_v34, %s1118_s8  ;;  %v919_v39 = vmul.f32 -1.442695, %v693_v38 }
0x118f   :  { %1076 = vpow2.f32 %v919_v39 }
0x1199   :  { %v1077_v40 = vpop.eup %1076 }
0x119a   :  { %v697_v41 = vadd.f32 1.0, %v1077_v40 }
0x119c   :  { %1078 = vrcp.f32 %v697_v41 }
0x11a6   :  { %v1079_v42 = vpop.eup %1078 }
0x11a7   :  { %v713_v48 = vsub.f32 1.0, %v1079_v42  ;;  %v722_v51 = vmul.f32 %v1079_v42, %v720_v49 }
0x11ff   :  { %v704_v43 = vpop.permute.xlu1 %703 }
0x1200   :  { %v706_v44 = vmul.f32 %v1079_v42, %v704_v43 }
0x1202   :  { %708 = vrot.lane.b32.xlu0 %v706_v44, %s1118_s8 }
0x1274   :  { %v709_v45 = vpop.permute.xlu0 %708 }
0x1275   :  { %v711_v46 = vadd.f32 %v709_v45, %v1226_v32 }
0x1277   :  { %1080 = vtanh.f32 %v711_v46 }
0x1281   :  { %v1081_v47 = vpop.eup %1080 }
0x1282   :  { %715 = vrot.lane.b32.xlu1 %v1081_v47, %s1119_s11 }
0x12f4   :  { %v716_v50 = vpop.permute.xlu1 %715 }
0x12f5   :  { %v718_v53 = vmul.f32 %v716_v50, %v713_v48 }
0x12f7   :  { %v723_v54 = vadd.f32 %v722_v51, %v718_v53 }
0x12f9   :  { %v730_v55 = vrot.slane %v723_v54, %v729_v52  ;;  %v732_v56 = vpack.c.bf16 %v723_v54, %v723_v54  ;;  %v810_v18 = vrot.slane %v723_v54, 7 }
0x12fb   :  { %v734_v57 = vrot.slane %v732_v56, 3  ;;  %v731_v58 = vsel %vm724_vm9, %v730_v55, %v639_v25 }
0x12fd   :  { %735 = vrot.lane.b32.xlu0 %v734_v57, %s1119_s11 }
0x136f   :  { %v736_v59 = vpop.permute.xlu0 %735 }
0x1370   :  { %1021 = vmatmul.mubr.msk.bf16.vlgmr.msra.gmra.mrb[16].mxu0 %vm105_vm2, %v736_v59 }
0x1443   :  { %v774_v60 = vpop.f32.mrb[16].mxu0 }
0x1444   :  { %v790_v61 = vadd.f32 %v774_v60, %v1213_v20  ;;  %v1022_v62 = vpop.f32.mrb[17].mxu0  ;;  %v781_v2 = vrot.slane %v774_v60, 1 }
0x1445   :  { %v777_v63 = vpop.f32.mrb[18].mxu0 }
0x1446   :  { %v792_v0 = vrot.slane %v790_v61, 1  ;;  %v1023_v1 = vpop.f32.mrb[19].mxu0  ;;  %v783_v3 = vadd.f32 %v781_v2, %v1229_v35  ;;  %v26_v35 = vld [vmem:[%s1377_s3 + $0x10] sm:$0xff] }
0x1447   :  { %v29_v13 = vpack.c.bf16 %v26_v35, %v25_v12 }
0x1448   :  { %793 = vrot.lane.b32.xlu1 %v792_v0, %s1118_s8  ;;  %v921_v5 = vmul.f32 -1.442695, %v783_v3 }
0x1449   :  { %1025 = vmatpush3.bf16.msra.mxu1 %v29_v13 }
0x144a   :  { %1082 = vpow2.f32 %v921_v5  ;;  %1026 = vmatprep.subr.bf16.mxu1 %v1116_v4 }
0x1454   :  { %v1083_v6 = vpop.eup %1082 }
0x1455   :  { %v787_v7 = vadd.f32 1.0, %v1083_v6 }
0x1457   :  { %1084 = vrcp.f32 %v787_v7 }
0x1461   :  { %v1085_v8 = vpop.eup %1084 }
0x1462   :  { %v803_v17 = vsub.f32 1.0, %v1085_v8  ;;  %v812_v21 = vmul.f32 %v1085_v8, %v810_v18 }
0x14ba   :  { %v794_v10 = vpop.permute.xlu1 %793 }
0x14bb   :  { %v796_v9 = vmul.f32 %v1085_v8, %v794_v10 }
0x14bd   :  { %798 = vrot.lane.b32.xlu0 %v796_v9, %s1118_s8 }
0x152f   :  { %v799_v20 = vpop.permute.xlu0 %798 }
0x1530   :  { %v801_v11 = vadd.f32 %v799_v20, %v1226_v32  ;;  %v27_v32 = vld [vmem:[%s1377_s3 + $0x18] sm:$0xff] }
0x1531   :  { %v30_v16 = vpack.c.bf16 %v28_v15, %v27_v32 }
0x1532   :  { %1086 = vtanh.f32 %v801_v11 }
0x1533   :  { %1027 = vmatpush3.bf16.msra.mxu1 %v30_v16 }
0x153c   :  { %v1087_v14 = vpop.eup %1086 }
0x153d   :  { %805 = vrot.lane.b32.xlu1 %v1087_v14, %s1119_s11 }
0x15af   :  { %v806_v19 = vpop.permute.xlu1 %805 }
0x15b0   :  { %v808_v23 = vmul.f32 %v806_v19, %v803_v17 }
0x15b2   :  { %v813_v24 = vadd.f32 %v812_v21, %v808_v23 }
0x15b4   :  { %v820_v4 = vrot.slane %v813_v24, %v819_v22  ;;  %823 = vrot.lane.b32.xlu1 %v813_v24, %s1119_s11 }
0x15b6   :  { %v821_v25 = vsel %vm814_vm10, %v820_v4, %v731_v58 }
0x15b7   :  { %v828_v26 = vpack.c.bf16 %v821_v25, %v821_v25 }
0x15b9   :  { %834 = vrot.lane.b32.xlu0 %v828_v26, %s1119_s11 }
0x1626   :  { %v824_v28 = vpop.permute.xlu1 %823 }
0x1627   :  { %827 = vst.msk [vmem:[#allocation2 - $0x7] sm:$0x80] %vm826_vm11, %v824_v28 }
0x162b   :  { %v835_v29 = vpop.permute.xlu0 %834 }
0x162c   :  { %1029 = vmatmul.mubr.msk.bf16.vlgmr.msra.gmra.mrb[16].mxu1 %vm105_vm2, %v835_v29 }
0x162d   :  { %1103 = shalt.err (!%p1100_p4)
}
0x162e   :  { %s1104_s26 = scalar_lea.hbm %s1379_s5, 16 }
0x162f   :  { %p1105_p5 = scmp.ne.s32.totalorder %s1379_s5, %s1104_s26  ;;  %p1108_p6 = scmp.lt.u32.totalorder %s1104_s26, %s1379_s5 }
0x1631   :  { %p1110_p7 = pnand %p1108_p6, %p1105_p5 }
0x1633   :  { %1113 = shalt.err (!%p1110_p7)
}
0x1634   :  { %897 = dma.vmem_to_hbm [thread:$0]  %s895_s22, 16, %s1379_s5, [#allocation3]   ;;  %v922_v27 = vld [vmem:[%s1377_s3 + $0x3] ss:$0 sm:$0xff] }
0x16ff   :  { %v873_v30 = vpop.f32.mrb[16].mxu1 }
0x1700   :  { %v874_v31 = vadd.f32 %v922_v27, %v873_v30  ;;  %v1030_v33 = vpop.f32.mrb[17].mxu1 }
0x1701   :  { %v876_v34 = vpop.f32.mrb[18].mxu1 }
0x1702   :  { %v924_v36 = vmul.f32 -1.442695, %v874_v31  ;;  %v1031_v37 = vpop.f32.mrb[19].mxu1 }
0x1704   :  { %1088 = vpow2.f32 %v924_v36 }
0x170e   :  { %v1089_v38 = vpop.eup %1088 }
0x170f   :  { %v882_v39 = vadd.f32 1.0, %v1089_v38 }
0x1711   :  { %1090 = vrcp.f32 %v882_v39 }
0x171b   :  { %v1091_v40 = vpop.eup %1090 }
0x171c   :  { %885 = vst [vmem:[%s1378_s4] sm:$0xff] %v1091_v40 }
0x171d   :  { %1114 = dma.done.wait [#allocation3], 16  }
0x171e   :  { %1115 = vsyncadd [#allocation3], 4294967280 }
0x171f   :  { %903 = vsyncpa [#allocation3], 1 }

</bundles_post_ra>
